<compile_context>
chip_gen: v5e
topology: v5e:2x2
jax: 0.10.0
libtpu: 0.0.40
codegen_flags: <defaults>
</compile_context>

<pallas_src>
import jax
import jax.numpy as jnp
from jax.experimental import pallas as pl
from jax.experimental.pallas import tpu as pltpu


_PER_BUF_BLOCK_BYTES = 4 * 1024 * 1024    # per-buffer block soft cap (~4 MiB)
_VMEM_LIMIT_BYTES = 32 * 1024 * 1024      # safe scoped-VMEM limit on v5e/v6e/v7x
_LANE_BYTES_CAP = 8 * 1024                # lane tile cap in bytes (dtype-aware)


def _copy_kernel(x_ref, o_ref):
    # Straight full-extent vld/vst stream: blocks are identical for in/out,
    # so no in-kernel slice and no extra VMEM materialization.
    o_ref[...] = x_ref[...]


def _slice_copy_kernel(x_ref, o_ref):
    # Small-L fallback only: input block carries the full L, keep the prefix.
    o_ref[...] = x_ref[:, : o_ref.shape[-1]]


def _round_up(a, b):
    return -(-a // b) * b


def _pick_tr(rows, row_bytes):
    """Row (sublane) tile: biggest that fits the per-buffer block budget.

    Multiples of 32 keep the block legal for f32/bf16/int8 sublane packing;
    a block equal to the full row dim is always legal.
    """
    tr_budget = max(1, _PER_BUF_BLOCK_BYTES // max(row_bytes, 1))
    if rows <= tr_budget and rows <= 1024:
        tr = rows
    else:
        tr = min(1024, max(32, (tr_budget // 32) * 32))
    # v7x megacore: give the parallel row axis >=2 steps so both TensorCores
    # get work (one extra grid step is harmless on v5e/v6e).
    if tr == rows and rows >= 64:
        tr = _round_up(rows // 2, 32)
    return tr


def chomp1d(x: jax.Array, chomp_size: int) -> jax.Array:
    """Equivalent of torch Chomp1d: x[:, :, :-chomp_size] for an NCL tensor."""
    assert chomp_size > 0, "chomp_size must be positive"
    n, c, l = x.shape
    l_out = l - chomp_size
    assert l_out > 0, "chomp_size must be smaller than the sequence length"

    rows = n * c
    itemsize = jnp.dtype(x.dtype).itemsize
    x2 = x.reshape(rows, l)  # free reshape: NCL is contiguous over (N*C, L)

    lane_cap = max(128, _LANE_BYTES_CAP // itemsize)  # 2048 f32 / 4096 bf16 / 8192 i8

    if l_out < 128:
        # ---- Path C: tiny kept width --------------------------------------
        # Input block spans the full L (legal: equals the array dim); output
        # block spans the full l_out; keep the prefix in-kernel.
        tr = _pick_tr(rows, l * itemsize)
        grid = (pl.cdiv(rows, tr),)
        in_spec = pl.BlockSpec((tr, l), lambda i: (i, 0))
        out_spec = pl.BlockSpec((tr, l_out), lambda i: (i, 0))
        kernel = _slice_copy_kernel
        dims = ("parallel",)
    elif l_out % 128 == 0 and min(rows, 32) * l_out * itemsize <= _PER_BUF_BLOCK_BYTES:
        # ---- Path A: rows-only grid, fully lane-dense ----------------------
        # Input block width l_out is a multiple of 128 (legal), so the input
        # DMA never touches the chomped tail and no output store is masked.
        tr = _pick_tr(rows, l_out * itemsize)
        grid = (pl.cdiv(rows, tr),)
        in_spec = pl.BlockSpec((tr, l_out), lambda i: (i, 0))
        out_spec = pl.BlockSpec((tr, l_out), lambda i: (i, 0))
        kernel = _copy_kernel
        dims = ("parallel",)
    else:
        # ---- Path B: 2-D tiled grid over the kept region only --------------
        tl_cap = max(128, min(lane_cap, (l_out // 128) * 128))
        steps = pl.cdiv(l_out, tl_cap)
        tl = tl_cap
        for cand in range(tl_cap, 127, -128):
            if pl.cdiv(l_out, cand) != steps:
                break  # smaller tiles would only add grid steps
            if l_out % cand == 0:
                tl = cand  # same step count, no ragged (masked) last block
                break
        tr = _pick_tr(rows, tl * itemsize)
        grid = (pl.cdiv(rows, tr), pl.cdiv(l_out, tl))
        # Ragged last lane block (if any): input DMA reads a few lanes past
        # l_out into the chomp tail / padding; output writes are masked, so
        # this is benign — do not "optimize" it into an unmasked store.
        in_spec = pl.BlockSpec((tr, tl), lambda i, j: (i, j))
        out_spec = pl.BlockSpec((tr, tl), lambda i, j: (i, j))
        kernel = _copy_kernel
        dims = ("parallel", "parallel")

    out2 = pl.pallas_call(
        kernel,
        out_shape=jax.ShapeDtypeStruct((rows, l_out), x.dtype),
        grid=grid,
        in_specs=[in_spec],
        out_specs=out_spec,
        compiler_params=pltpu.CompilerParams(
            dimension_semantics=dims,
            vmem_limit_bytes=_VMEM_LIMIT_BYTES,
        ),
        cost_estimate=pl.CostEstimate(
            flops=0,
            transcendentals=0,
            bytes_accessed=2 * rows * l_out * itemsize,
        ),
    )(x2)

    return out2.reshape(n, c, l_out)


if __name__ == "__main__":
    key = jax.random.PRNGKey(0)
    k1, k2, k3 = jax.random.split(key, 3)

    # Path C: tiny TCN-sized input (l_out < 128).
    x1 = jax.random.normal(k1, (2, 4, 16), dtype=jnp.float32)
    o1 = jax.block_until_ready(chomp1d(x1, 3))
    r1 = x1[:, :, :-3]
    assert o1.shape == r1.shape, (o1.shape, r1.shape)
    assert jnp.array_equal(o1, r1), "Pallas Chomp1d mismatch (small-L path)"

    # Path A: rows-only lane-dense grid (l_out == 128, multiple of 128).
    x2 = jax.random.normal(k2, (2, 4, 131), dtype=jnp.float32)
    o2 = jax.block_until_ready(chomp1d(x2, 3))
    r2 = x2[:, :, :-3]
    assert o2.shape == r2.shape, (o2.shape, r2.shape)
    assert jnp.array_equal(o2, r2), "Pallas Chomp1d mismatch (rows-only path)"

    # Path B: 2-D tiled grid with a ragged (masked) last lane block (l_out=381).
    x3 = jax.random.normal(k3, (2, 8, 384), dtype=jnp.float32)
    o3 = jax.block_until_ready(chomp1d(x3, 3))
    r3 = x3[:, :, :-3]
    assert o3.shape == r3.shape, (o3.shape, r3.shape)
    assert jnp.array_equal(o3, r3), "Pallas Chomp1d mismatch (tiled path)"

    print("KERNEL_OK")
</pallas_src>

<mosaic_0001>
module attributes {stable_mosaic.version = 11 : i64} {
  func.func @_slice_copy_kernel(%arg0: i32, %arg1: memref<8x16xf32, #tpu.memory_space<vmem>>, %arg2: memref<8x13xf32, #tpu.memory_space<vmem>>) attributes {dimension_semantics = [#tpu.dimension_semantics<parallel>], iteration_bounds = array<i64: 1>, scalar_prefetch = 0 : i64, scratch_operands = 0 : i64, tpu.core_type = #tpu.core_type<tc>, window_params = [{transform_indices = @transform_0, window_bounds = array<i64: 8, 16>}, {transform_indices = @transform_1, window_bounds = array<i64: 8, 13>}]} {
    %c0 = arith.constant 0 : index
    %c0_0 = arith.constant 0 : index
    %0 = vector.load %arg1[%c0, %c0_0] : memref<8x16xf32, #tpu.memory_space<vmem>>, vector<8x13xf32>
    %c0_1 = arith.constant 0 : index
    %c0_2 = arith.constant 0 : index
    %1 = vector.load %arg2[%c0_1, %c0_2] : memref<8x13xf32, #tpu.memory_space<vmem>>, vector<8x13xf32>
    tpu.vector_store %arg2[%c0_1, %c0_2], %0 {strides = array<i32>} : memref<8x13xf32, #tpu.memory_space<vmem>>, vector<8x13xf32>,
    return
  }
  func.func @transform_0(%arg0: i32) -> (i32, i32) {
    %c0_i32 = arith.constant 0 : i32
    %c0_i32_0 = arith.constant 0 : i32
    return %arg0, %c0_i32 : i32, i32
  }
  func.func @transform_1(%arg0: i32) -> (i32, i32) {
    %c0_i32 = arith.constant 0 : i32
    %c0_i32_0 = arith.constant 0 : i32
    return %arg0, %c0_i32 : i32, i32
  }
}

</mosaic_0001>

<bundles_post_ra>
// kernel: tpu_custom_call.1
= control target key start
LH: loop header
LB: loop body
LE: loop exit
PB: predicated region body
PF: predicated region fallthrough
CT: control target
= control target key end

     0   :  { %6 = vsyncpa [#allocation3], 0  ;;  %s115_s0 = inlined_call_operand.hbm [shape: f32[8,16], index: 0, kind: input, shape index: {}]   ;;  %s116_s1 = inlined_call_operand.hbm [shape: f32[8,13], index: 1, kind: output, shape index: {}]  }
   0x1   :  { %7 = vsyncpa [#allocation4], 0  ;;  %s13_s8 = sshll.u32 %s115_s0, 4  ;;  %s97_s9 = smov [#allocation2]   ;;  %s14_s8 = int_to_ptr.hbm [resolvable:$true] %s13_s8 }
   0x2   :  { %s15_s10 = sshll.u32 %s97_s9, 4  ;;  %s16_s10 = int_to_ptr.vmem [resolvable:$true] %s15_s10 }
   0x3   :  { %18 = dma.hbm_to_vmem [thread:$0]  %s14_s8, 128, %s16_s10, [#allocation3]  }
   0x4   :  { %93 = dma.done.wait [#allocation3], 128  }
   0x5   :  { %94 = vsyncadd [#allocation3], 4294967168  ;;  %s98_s11 = smov [#allocation5]   ;;  %s33_s15 = sshll.u32 %s116_s1, 4  ;;  %vm24_vm0 = vcmask 105472   ;;  %v23_v0 = vld [vmem:[#allocation2] sm:$0xff]  ;;  %s34_s15 = int_to_ptr.hbm [resolvable:$true] %s33_s15 }
   0x6   :  { %s31_s12 = sshll.u32 %s98_s11, 4  ;;  %25 = vst.msk [vmem:[#allocation5] sm:$0xff] %vm24_vm0, %v23_v0  ;;  %s32_s12 = int_to_ptr.vmem [resolvable:$true] %s31_s12 }
   0x7   :  { %36 = dma.vmem_to_hbm [thread:$0]  %s32_s12, 128, %s34_s15, [#allocation4]  }
   0x8   :  { %95 = dma.done.wait [#allocation4], 128  }
   0x9   :  { %96 = vsyncadd [#allocation4], 4294967168 }
   0xa   :  { %41 = vsyncpa [#allocation3], 1 }
   0xb   :  { %42 = vsyncpa [#allocation4], 1 }

</bundles_post_ra>
